<compile_context>
chip_gen: v5e
topology: v5e:2x2
jax: 0.10.0
libtpu: 0.0.40
codegen_flags: <defaults>
</compile_context>

<pallas_src>
import jax
import jax.numpy as jnp
from jax.experimental import pallas as pl
from jax.experimental.pallas import tpu as pltpu
from jax.scipy.linalg import block_diag


def encoder_emb_kernel(x_ref, w_ref, rest_ref, out_ref):
    # x_ref    : (Bb, Kpad)        zero-padded flattened series, lane-dense
    # w_ref    : (Kpad, S*rC)      block-diagonal conv weight slab (resident)
    # rest_ref : (1, S*rC)         per-slot additive terms (vec/emb/bias), tiled over time
    # out_ref  : (Bb, S*rC)        input_emb, lane-dense (s*rC + t*C + c) layout
    acc = jnp.dot(x_ref[...], w_ref[...], preferred_element_type=jnp.float32)
    out_ref[...] = (acc + rest_ref[...]).astype(out_ref.dtype)


def init_params(key, endo_dim, exo_dim, enc_dim, kernel_size):
    ks = jax.random.split(key, 5)
    return {
        "conv_w": jax.random.normal(ks[0], (enc_dim, 1, kernel_size), jnp.float32) * 0.1,
        "conv_b": jax.random.normal(ks[1], (enc_dim,), jnp.float32) * 0.1,
        "vec": jax.random.normal(ks[2], (1, 1, 1, enc_dim), jnp.float32),
        "series_emb": jax.random.normal(ks[3], (endo_dim + exo_dim + 1, enc_dim), jnp.float32),
        "type_emb": jax.random.normal(ks[4], (3, enc_dim), jnp.float32),
    }


def _round_up(x, m):
    return ((x + m - 1) // m) * m


def _pick_b_blk(b_k, cap=256):
    """b_k is a multiple of 8.  Multiple-of-8 block, <= cap, grid >= 2 when possible."""
    if b_k <= 8:
        return b_k
    half = _round_up(b_k // 2, 8)       # keep >= 2 grid steps for v7x's two TensorCores
    return min(cap, half)


def encoder_input_emb(ref_x, ref_y, params, *, b_blk=None):
    """input_emb in (batch, slot, time, channel) layout -- the Pallas hot path."""
    b, n, r = ref_x.shape
    _, m, _ = ref_y.shape
    C, _, K = params["conv_w"].shape
    MN = m + n
    S = MN + 1
    rC = r * C
    rp = r + K - 1
    left = (K - 1) // 2

    # ---- wrapper-side glue (tiny, fused by XLA) ----------------------------
    # cat([ref_y, ref_x], dim=1) + PyTorch 'same' padding, then flatten
    # (slot, time') into the matmul contraction dim.
    x_cat = jnp.concatenate([ref_y, ref_x], axis=1)                      # (b, MN, r)
    xpad = jnp.pad(x_cat, ((0, 0), (0, 0), (left, (K - 1) - left)))      # (b, MN, rp)
    Kdim = MN * rp
    Kpad = _round_up(Kdim, 128)                                          # unmasked 128-lane loads
    xflat = jnp.pad(xpad.reshape(b, Kdim), ((0, 0), (0, Kpad - Kdim)))   # (b, Kpad)

    # Pad batch to a multiple of 8 so every sublane block is 8-aligned.
    b_k = _round_up(b, 8)
    if b_k != b:
        xflat = jnp.pad(xflat, ((0, b_k - b), (0, 0)))

    # Conv as a matmul: W_full[t', t*C + c] = conv_w[c, 0, t' - t] (valid taps only).
    w_ck = params["conv_w"][:, 0, :]                                     # (C, K)
    kk = jnp.arange(rp)[:, None] - jnp.arange(r)[None, :]                # (rp, r)
    valid = (kk >= 0) & (kk < K)
    W_full = jnp.where(valid[:, :, None], w_ck.T[jnp.clip(kk, 0, K - 1)], 0.0)
    W_full = W_full.reshape(rp, rC)                                      # (rp, rC)
    # Block-diagonal over the MN conv slots; slot-0 output columns are all zero.
    W_diag = block_diag(*([W_full] * MN))                                # (MN*rp, MN*rC)
    W_big = jnp.concatenate([jnp.zeros((Kdim, rC), jnp.float32), W_diag], axis=1)
    W_big = jnp.pad(W_big, ((0, Kpad - Kdim), (0, 0)))                   # (Kpad, S*rC)

    # Per-slot additive terms (vec for slot 0, conv bias for conv slots),
    # pre-tiled over time so the kernel does one broadcast-add.
    type_ids = jnp.array([0] + [1] * m + [2] * n, dtype=jnp.int32)
    add_c = params["series_emb"][:S] + params["type_emb"][type_ids]      # (S, C)
    slot0_c = add_c[0] + params["vec"].reshape(C)                        # (C,)
    conv_c = add_c[1:] + params["conv_b"][None, :]                       # (MN, C)
    per_slot = jnp.concatenate([slot0_c[None], conv_c], axis=0)          # (S, C)
    rest_flat = jnp.tile(per_slot[:, None, :], (1, r, 1)).reshape(1, S * rC)

    # ---- Pallas kernel: input_emb in lane-dense (b_k, S*r*C) layout --------
    if b_blk is None:
        b_blk = _pick_b_blk(b_k)
    else:
        b_blk = min(b_k, _round_up(b_blk, 8))
    grid = (pl.cdiv(b_k, b_blk),)

    cost = pl.CostEstimate(
        flops=2 * b * MN * r * C * K,
        transcendentals=0,
        bytes_accessed=4 * (b_k * Kpad + Kpad * S * rC + S * rC + b_k * S * rC),
    )

    # TODO(synk): emit bf16 output here if the downstream encoder accepts it
    # (halves the dominating HBM write); kept f32 for exact parity checks.
    input_emb_flat = pl.pallas_call(
        encoder_emb_kernel,
        out_shape=jax.ShapeDtypeStruct((b_k, S * rC), jnp.float32),
        grid_spec=pltpu.PrefetchScalarGridSpec(
            num_scalar_prefetch=0,
            grid=grid,
            in_specs=[
                pl.BlockSpec((b_blk, Kpad), lambda i: (i, 0)),
                pl.BlockSpec((Kpad, S * rC), lambda i: (0, 0)),
                pl.BlockSpec((1, S * rC), lambda i: (0, 0)),
            ],
            out_specs=pl.BlockSpec((b_blk, S * rC), lambda i: (i, 0)),
        ),
        compiler_params=pltpu.CompilerParams(dimension_semantics=("parallel",)),
        cost_estimate=cost,
    )(xflat, W_big, rest_flat)

    # Layout plumbing only: drop batch padding, unflatten slots/time/channel.
    return input_emb_flat[:b].reshape(b, S, r, C)


def encoder_forward(ref_x, ref_y, params, *, b_blk=None):
    input_emb = encoder_input_emb(ref_x, ref_y, params, b_blk=b_blk)

    # TODO(synk): TransformerCNN (self.encoder) is not defined in the provided
    # source module; it is treated as identity here (nlayer/dilation unused).
    enc_out = input_emb

    # PyTorch: permute(0,1,3,2) -> encoder -> [:, 0, :, :].mean(-1)
    # == slot 0, mean over time in our (b, slot, time, channel) layout.
    return enc_out[:, 0, :, :].mean(axis=1)              # (b, C)


def encoder_input_emb_ref(ref_x, ref_y, params):
    """Pure-JAX reference for input_emb (correctness check only)."""
    b, n, r = ref_x.shape
    _, m, _ = ref_y.shape
    C, _, K = params["conv_w"].shape
    MN = m + n
    left = (K - 1) // 2
    x = jnp.concatenate([ref_y, ref_x], axis=1)
    xpad = jnp.pad(x, ((0, 0), (0, 0), (left, (K - 1) - left)))
    taps = jnp.stack([xpad[..., k:k + r] for k in range(K)], axis=-1)     # (b, MN, r, K)
    val = jnp.einsum("bsrk,ck->bsrc", taps, params["conv_w"][:, 0, :])
    val = val + params["conv_b"][None, None, None, :]
    vec = jnp.broadcast_to(params["vec"], (b, 1, r, C))
    val_emb = jnp.concatenate([vec, val], axis=1)                         # (b, MN+1, r, C)
    type_ids = jnp.array([0] + [1] * m + [2] * n, dtype=jnp.int32)
    add = params["series_emb"][jnp.arange(MN + 1)] + params["type_emb"][type_ids]
    return val_emb + add[None, :, None, :]


if __name__ == "__main__":
    endo_dim, exo_dim = 3, 2
    enc_dim, kernel_size = 32, 3
    b, n, m, r = 2, endo_dim, exo_dim, 16   # n endo series (ref_x), m exo series (ref_y)

    key = jax.random.PRNGKey(0)
    kx, ky, kp = jax.random.split(key, 3)
    ref_x = jax.random.normal(kx, (b, n, r), jnp.float32)
    ref_y = jax.random.normal(ky, (b, m, r), jnp.float32)
    params = init_params(kp, endo_dim, exo_dim, enc_dim, kernel_size)

    emb = encoder_input_emb(ref_x, ref_y, params)
    jax.block_until_ready(emb)
    emb_ref = encoder_input_emb_ref(ref_x, ref_y, params)
    assert emb.shape == (b, m + n + 1, r, enc_dim)
    assert bool(jnp.allclose(emb, emb_ref, rtol=1e-4, atol=1e-4))

    out = encoder_forward(ref_x, ref_y, params)
    jax.block_until_ready(out)
    assert out.shape == (b, enc_dim)
    assert bool(jnp.all(jnp.isfinite(out)))
    print("KERNEL_OK")
</pallas_src>

<mosaic_0001>
module attributes {stable_mosaic.version = 11 : i64} {
  func.func @encoder_emb_kernel(%arg0: i32, %arg1: memref<8x128xf32, #tpu.memory_space<vmem>>, %arg2: memref<128x3072xf32, #tpu.memory_space<vmem>>, %arg3: memref<1x3072xf32, #tpu.memory_space<vmem>>, %arg4: memref<8x3072xf32, #tpu.memory_space<vmem>>) attributes {dimension_semantics = [#tpu.dimension_semantics<parallel>], iteration_bounds = array<i64: 1>, scalar_prefetch = 0 : i64, scratch_operands = 0 : i64, tpu.core_type = #tpu.core_type<tc>, window_params = [{transform_indices = @transform_0, window_bounds = array<i64: 8, 128>}, {pipeline_mode = #tpu.pipeline_mode<synchronous>, transform_indices = @transform_1, window_bounds = array<i64: 128, 3072>}, {pipeline_mode = #tpu.pipeline_mode<synchronous>, transform_indices = @transform_2, window_bounds = array<i64: 1, 3072>}, {transform_indices = @transform_3, window_bounds = array<i64: 8, 3072>}]} {
    %c0 = arith.constant 0 : index
    %c0_0 = arith.constant 0 : index
    %0 = vector.load %arg1[%c0, %c0_0] : memref<8x128xf32, #tpu.memory_space<vmem>>, vector<8x128xf32>
    %c0_1 = arith.constant 0 : index
    %c0_2 = arith.constant 0 : index
    %1 = vector.load %arg2[%c0_1, %c0_2] : memref<128x3072xf32, #tpu.memory_space<vmem>>, vector<128x3072xf32>
    %cst = arith.constant dense<0.000000e+00> : vector<8x3072xf32>
    %2 = tpu.matmul %0, %1, %cst {dimension_numbers = #tpu.dot_dimension_numbers<[1], [0], [0], [1], [0, 0, 1, 1], [], []>} : vector<8x128xf32>, vector<128x3072xf32>, vector<8x3072xf32> -> vector<8x3072xf32>
    %c0_3 = arith.constant 0 : index
    %c0_4 = arith.constant 0 : index
    %3 = vector.load %arg3[%c0_3, %c0_4] : memref<1x3072xf32, #tpu.memory_space<vmem>>, vector<1x3072xf32>
    %4 = vector.broadcast %3 : vector<1x3072xf32> to vector<8x3072xf32>
    %5 = arith.addf %2, %4 : vector<8x3072xf32>
    %c0_5 = arith.constant 0 : index
    %c0_6 = arith.constant 0 : index
    %6 = vector.load %arg4[%c0_5, %c0_6] : memref<8x3072xf32, #tpu.memory_space<vmem>>, vector<8x3072xf32>
    tpu.vector_store %arg4[%c0_5, %c0_6], %5 {strides = array<i32>} : memref<8x3072xf32, #tpu.memory_space<vmem>>, vector<8x3072xf32>,
    return
  }
  func.func @transform_0(%arg0: i32) -> (i32, i32) {
    %c0_i32 = arith.constant 0 : i32
    %c0_i32_0 = arith.constant 0 : i32
    return %arg0, %c0_i32 : i32, i32
  }
  func.func @transform_1(%arg0: i32) -> (i32, i32) {
    %c0_i32 = arith.constant 0 : i32
    %c0_i32_0 = arith.constant 0 : i32
    %c0_i32_1 = arith.constant 0 : i32
    return %c0_i32, %c0_i32_0 : i32, i32
  }
  func.func @transform_2(%arg0: i32) -> (i32, i32) {
    %c0_i32 = arith.constant 0 : i32
    %c0_i32_0 = arith.constant 0 : i32
    %c0_i32_1 = arith.constant 0 : i32
    return %c0_i32, %c0_i32_0 : i32, i32
  }
  func.func @transform_3(%arg0: i32) -> (i32, i32) {
    %c0_i32 = arith.constant 0 : i32
    %c0_i32_0 = arith.constant 0 : i32
    return %arg0, %c0_i32 : i32, i32
  }
}

</mosaic_0001>

<bundles_post_ra>
// kernel: tpu_custom_call.1
= control target key start
LH: loop header
LB: loop body
LE: loop exit
PB: predicated region body
PF: predicated region fallthrough
CT: control target
= control target key end

     0   :  { %8 = vsyncpa [#allocation3], 0  ;;  %s1196_s0 = inlined_call_operand.hbm [shape: f32[8,128], index: 0, kind: input, shape index: {}]   ;;  %s1197_s1 = inlined_call_operand.hbm [shape: f32[128,3072], index: 1, kind: input, shape index: {}]   ;;  %s1198_s2 = inlined_call_operand.hbm [shape: f32[1,3072], index: 2, kind: input, shape index: {}]   ;;  %s1199_s3 = inlined_call_operand.hbm [shape: f32[8,3072], index: 3, kind: output, shape index: {}]  }
   0x1   :  { %9 = vsyncpa [#allocation6], 0  ;;  %s26_s14 = sshll.u32 %s1197_s1, 4  ;;  %s27_s14 = int_to_ptr.hbm [resolvable:$true] %s26_s14 }
   0x2   :  { %10 = vsyncpa [#allocation4], 0  ;;  %s1128_s15 = smov [#allocation5]   ;;  %s16_s19 = sshll.u32 %s1196_s0, 4  ;;  %s17_s19 = int_to_ptr.hbm [resolvable:$true] %s16_s19 }
   0x3   :  { %s28_s16 = sshll.u32 %s1128_s15, 4  ;;  %s1129_s20 = smov 3072   ;;  %s29_s16 = int_to_ptr.vmem [resolvable:$true] %s28_s16 }
   0x4   :  { %s1130_s21 = smov 192   ;;  %s1131_s22 = smov [#allocation2]  }
   0x5   :  { %34 = dma.hbm_to_vmem [thread:$0]  %s27_s14, 49152, %s29_s16, [#allocation6], %s1129_s20, %s1129_s20, %s1130_s21  }
   0x6   :  { %s18_s23 = sshll.u32 %s1131_s22, 4  ;;  %s40_s26 = sshll.u32 %s1198_s2, 4  ;;  %s19_s23 = int_to_ptr.vmem [resolvable:$true] %s18_s23  ;;  %s41_s26 = int_to_ptr.hbm [resolvable:$true] %s40_s26 }
   0x7   :  { %21 = dma.hbm_to_vmem [thread:$0]  %s17_s19, 128, %s19_s23, [#allocation3]  }
   0x8   :  { %s1132_s1 = smov [#allocation7]  }
   0x9   :  { %s42_s27 = sshll.u32 %s1132_s1, 4  ;;  %s43_s27 = int_to_ptr.vmem [resolvable:$true] %s42_s27 }
   0xa   :  { %45 = dma.hbm_to_vmem [thread:$0]  %s41_s26, 384, %s43_s27, [#allocation6]  }
   0xb   :  { %1122 = dma.done.wait [#allocation3], 128  }
   0xc   :  { %1123 = vsyncadd [#allocation3], 4294967168 }
   0xd   :  { %1124 = dma.done.wait [#allocation6], 49536  }
   0xe   :  { %1125 = vsyncadd [#allocation6], 4294917760  ;;  %v421_v0 = vld [vmem:[#allocation5 + $0xb50] sm:$0xff]  ;;  %v422_v1 = vld [vmem:[#allocation5 + $0xb58] sm:$0xff]  ;;  %s1133_s0 = smov [#allocation8]   ;;  %s1008_s30 = sshll.u32 %s1199_s3, 4  ;;  %s1009_s30 = int_to_ptr.hbm [resolvable:$true] %s1008_s30 }
   0xf   :  { %v397_v2 = vld [vmem:[#allocation5 + $0xa90] sm:$0xff]  ;;  %537 = vmatpush.msra.mxu2 %v421_v0  ;;  %557 = vmatpush.msra.mxu3 %v422_v1  ;;  %v398_v3 = vld [vmem:[#allocation5 + $0xa98] sm:$0xff]  ;;  %v419_v6 = vld [vmem:[#allocation5 + $0xb40] sm:$0xff]  ;;  %s1006_s2 = sshll.u32 %s1133_s0, 4  ;;  %s1007_s2 = int_to_ptr.vmem [resolvable:$true] %s1006_s2 }
  0x10   :  { %v373_v4 = vld [vmem:[#allocation5 + $0x9d0] sm:$0xff]  ;;  %v374_v5 = vld [vmem:[#allocation5 + $0x9d8] sm:$0xff]  ;;  %v420_v7 = vld [vmem:[#allocation5 + $0xb48] sm:$0xff]  ;;  %497 = vmatpush.msra.mxu0 %v419_v6 }
  0x11   :  { %538 = vmatpush.msra.mxu2 %v397_v2  ;;  %558 = vmatpush.msra.mxu3 %v398_v3  ;;  %v395_v8 = vld [vmem:[#allocation5 + $0xa80] sm:$0xff]  ;;  %v396_v9 = vld [vmem:[#allocation5 + $0xa88] sm:$0xff]  ;;  %v349_v10 = vld [vmem:[#allocation5 + $0x910] sm:$0xff] }
  0x12   :  { %517 = vmatpush.msra.mxu1 %v420_v7  ;;  %v350_v11 = vld [vmem:[#allocation5 + $0x918] sm:$0xff]  ;;  %v371_v12 = vld [vmem:[#allocation5 + $0x9c0] sm:$0xff]  ;;  %v372_v13 = vld [vmem:[#allocation5 + $0x9c8] sm:$0xff]  ;;  %498 = vmatpush.msra.mxu0 %v395_v8 }
  0x13   :  { %539 = vmatpush.msra.mxu2 %v373_v4  ;;  %559 = vmatpush.msra.mxu3 %v374_v5  ;;  %v325_v14 = vld [vmem:[#allocation5 + $0x850] sm:$0xff]  ;;  %v326_v15 = vld [vmem:[#allocation5 + $0x858] sm:$0xff]  ;;  %v347_v16 = vld [vmem:[#allocation5 + $0x900] sm:$0xff] }
  0x14   :  { %518 = vmatpush.msra.mxu1 %v396_v9  ;;  %v348_v17 = vld [vmem:[#allocation5 + $0x908] sm:$0xff]  ;;  %499 = vmatpush.msra.mxu0 %v371_v12  ;;  %v301_v18 = vld [vmem:[#allocation5 + $0x790] sm:$0xff]  ;;  %v302_v19 = vld [vmem:[#allocation5 + $0x798] sm:$0xff] }
  0x15   :  { %540 = vmatpush.msra.mxu2 %v349_v10  ;;  %560 = vmatpush.msra.mxu3 %v350_v11  ;;  %v323_v20 = vld [vmem:[#allocation5 + $0x840] sm:$0xff]  ;;  %v324_v21 = vld [vmem:[#allocation5 + $0x848] sm:$0xff]  ;;  %v277_v22 = vld [vmem:[#allocation5 + $0x6d0] sm:$0xff] }
  0x16   :  { %519 = vmatpush.msra.mxu1 %v372_v13  ;;  %500 = vmatpush.msra.mxu0 %v347_v16  ;;  %v278_v23 = vld [vmem:[#allocation5 + $0x6d8] sm:$0xff]  ;;  %v299_v24 = vld [vmem:[#allocation5 + $0x780] sm:$0xff]  ;;  %v300_v25 = vld [vmem:[#allocation5 + $0x788] sm:$0xff] }
  0x17   :  { %541 = vmatpush.msra.mxu2 %v325_v14  ;;  %561 = vmatpush.msra.mxu3 %v326_v15  ;;  %v253_v26 = vld [vmem:[#allocation5 + $0x610] sm:$0xff]  ;;  %v254_v27 = vld [vmem:[#allocation5 + $0x618] sm:$0xff]  ;;  %v275_v28 = vld [vmem:[#allocation5 + $0x6c0] sm:$0xff] }
  0x18   :  { %520 = vmatpush.msra.mxu1 %v348_v17  ;;  %501 = vmatpush.msra.mxu0 %v323_v20  ;;  %v276_v29 = vld [vmem:[#allocation5 + $0x6c8] sm:$0xff]  ;;  %v229_v30 = vld [vmem:[#allocation5 + $0x550] sm:$0xff]  ;;  %v230_v31 = vld [vmem:[#allocation5 + $0x558] sm:$0xff] }
  0x19   :  { %542 = vmatpush.msra.mxu2 %v301_v18  ;;  %562 = vmatpush.msra.mxu3 %v302_v19  ;;  %v251_v32 = vld [vmem:[#allocation5 + $0x600] sm:$0xff]  ;;  %v252_v33 = vld [vmem:[#allocation5 + $0x608] sm:$0xff]  ;;  %v205_v34 = vld [vmem:[#allocation5 + $0x490] sm:$0xff] }
  0x1a   :  { %521 = vmatpush.msra.mxu1 %v324_v21  ;;  %502 = vmatpush.msra.mxu0 %v299_v24  ;;  %v206_v35 = vld [vmem:[#allocation5 + $0x498] sm:$0xff]  ;;  %v227_v36 = vld [vmem:[#allocation5 + $0x540] sm:$0xff]  ;;  %v228_v37 = vld [vmem:[#allocation5 + $0x548] sm:$0xff] }
  0x1b   :  { %543 = vmatpush.msra.mxu2 %v277_v22  ;;  %563 = vmatpush.msra.mxu3 %v278_v23  ;;  %v181_v38 = vld [vmem:[#allocation5 + $0x3d0] sm:$0xff]  ;;  %v182_v39 = vld [vmem:[#allocation5 + $0x3d8] sm:$0xff]  ;;  %v203_v40 = vld [vmem:[#allocation5 + $0x480] sm:$0xff] }
  0x1c   :  { %522 = vmatpush.msra.mxu1 %v300_v25  ;;  %503 = vmatpush.msra.mxu0 %v275_v28  ;;  %v204_v41 = vld [vmem:[#allocation5 + $0x488] sm:$0xff]  ;;  %v157_v42 = vld [vmem:[#allocation5 + $0x310] sm:$0xff]  ;;  %v158_v43 = vld [vmem:[#allocation5 + $0x318] sm:$0xff] }
  0x1d   :  { %544 = vmatpush.msra.mxu2 %v253_v26  ;;  %564 = vmatpush.msra.mxu3 %v254_v27  ;;  %v179_v44 = vld [vmem:[#allocation5 + $0x3c0] sm:$0xff]  ;;  %v180_v45 = vld [vmem:[#allocation5 + $0x3c8] sm:$0xff]  ;;  %v133_v46 = vld [vmem:[#allocation5 + $0x250] sm:$0xff] }
  0x1e   :  { %523 = vmatpush.msra.mxu1 %v276_v29  ;;  %504 = vmatpush.msra.mxu0 %v251_v32  ;;  %v134_v47 = vld [vmem:[#allocation5 + $0x258] sm:$0xff]  ;;  %v155_v48 = vld [vmem:[#allocation5 + $0x300] sm:$0xff]  ;;  %v156_v49 = vld [vmem:[#allocation5 + $0x308] sm:$0xff] }
  0x1f   :  { %545 = vmatpush.msra.mxu2 %v229_v30  ;;  %565 = vmatpush.msra.mxu3 %v230_v31  ;;  %v109_v50 = vld [vmem:[#allocation5 + $0x190] sm:$0xff]  ;;  %v110_v51 = vld [vmem:[#allocation5 + $0x198] sm:$0xff]  ;;  %v131_v52 = vld [vmem:[#allocation5 + $0x240] sm:$0xff] }
  0x20   :  { %524 = vmatpush.msra.mxu1 %v252_v33  ;;  %505 = vmatpush.msra.mxu0 %v227_v36  ;;  %v132_v53 = vld [vmem:[#allocation5 + $0x248] sm:$0xff]  ;;  %v85_v54 = vld [vmem:[#allocation5 + $0xd0] sm:$0xff]  ;;  %v86_v55 = vld [vmem:[#allocation5 + $0xd8] sm:$0xff] }
  0x21   :  { %546 = vmatpush.msra.mxu2 %v205_v34  ;;  %566 = vmatpush.msra.mxu3 %v206_v35  ;;  %v107_v56 = vld [vmem:[#allocation5 + $0x180] sm:$0xff]  ;;  %v108_v57 = vld [vmem:[#allocation5 + $0x188] sm:$0xff]  ;;  %v61_v58 = vld [vmem:[#allocation5 + $0x10] sm:$0xff] }
  0x22   :  { %525 = vmatpush.msra.mxu1 %v228_v37  ;;  %506 = vmatpush.msra.mxu0 %v203_v40  ;;  %v62_v59 = vld [vmem:[#allocation5 + $0x18] sm:$0xff]  ;;  %v425_v60 = vld [vmem:[#allocation5 + $0xb70] sm:$0xff]  ;;  %v83_v62 = vld [vmem:[#allocation5 + $0xc0] sm:$0xff] }
  0x23   :  { %547 = vmatpush.msra.mxu2 %v181_v38  ;;  %567 = vmatpush.msra.mxu3 %v182_v39  ;;  %v426_v61 = vld [vmem:[#allocation5 + $0xb78] sm:$0xff]  ;;  %v84_v63 = vld [vmem:[#allocation5 + $0xc8] sm:$0xff]  ;;  %v401_v0 = vld [vmem:[#allocation5 + $0xab0] sm:$0xff] }
  0x24   :  { %526 = vmatpush.msra.mxu1 %v204_v41  ;;  %507 = vmatpush.msra.mxu0 %v179_v44  ;;  %v402_v1 = vld [vmem:[#allocation5 + $0xab8] sm:$0xff]  ;;  %v59_v2 = vld [vmem:[#allocation5] sm:$0xff]  ;;  %v60_v3 = vld [vmem:[#allocation5 + $0x8] sm:$0xff] }
  0x25   :  { %548 = vmatpush.msra.mxu2 %v157_v42  ;;  %568 = vmatpush.msra.mxu3 %v158_v43  ;;  %v377_v4 = vld [vmem:[#allocation5 + $0x9f0] sm:$0xff]  ;;  %v378_v5 = vld [vmem:[#allocation5 + $0x9f8] sm:$0xff]  ;;  %v423_v6 = vld [vmem:[#allocation5 + $0xb60] sm:$0xff] }
  0x26   :  { %527 = vmatpush.msra.mxu1 %v180_v45  ;;  %508 = vmatpush.msra.mxu0 %v155_v48  ;;  %v424_v7 = vld [vmem:[#allocation5 + $0xb68] sm:$0xff]  ;;  %v353_v8 = vld [vmem:[#allocation5 + $0x930] sm:$0xff]  ;;  %v354_v9 = vld [vmem:[#allocation5 + $0x938] sm:$0xff] }
  0x27   :  { %549 = vmatpush.msra.mxu2 %v133_v46  ;;  %569 = vmatpush.msra.mxu3 %v134_v47  ;;  %v399_v10 = vld [vmem:[#allocation5 + $0xaa0] sm:$0xff]  ;;  %v400_v11 = vld [vmem:[#allocation5 + $0xaa8] sm:$0xff]  ;;  %v329_v12 = vld [vmem:[#allocation5 + $0x870] sm:$0xff] }
  0x28   :  { %528 = vmatpush.msra.mxu1 %v156_v49  ;;  %509 = vmatpush.msra.mxu0 %v131_v52  ;;  %v330_v13 = vld [vmem:[#allocation5 + $0x878] sm:$0xff]  ;;  %v375_v14 = vld [vmem:[#allocation5 + $0x9e0] sm:$0xff]  ;;  %v376_v15 = vld [vmem:[#allocation5 + $0x9e8] sm:$0xff] }
  0x29   :  { %550 = vmatpush.msra.mxu2 %v109_v50  ;;  %570 = vmatpush.msra.mxu3 %v110_v51  ;;  %v305_v16 = vld [vmem:[#allocation5 + $0x7b0] sm:$0xff]  ;;  %v306_v17 = vld [vmem:[#allocation5 + $0x7b8] sm:$0xff]  ;;  %v351_v18 = vld [vmem:[#allocation5 + $0x920] sm:$0xff] }
  0x2a   :  { %529 = vmatpush.msra.mxu1 %v132_v53  ;;  %510 = vmatpush.msra.mxu0 %v107_v56  ;;  %v352_v19 = vld [vmem:[#allocation5 + $0x928] sm:$0xff]  ;;  %v281_v20 = vld [vmem:[#allocation5 + $0x6f0] sm:$0xff]  ;;  %v282_v21 = vld [vmem:[#allocation5 + $0x6f8] sm:$0xff] }
  0x2b   :  { %551 = vmatpush.msra.mxu2 %v85_v54  ;;  %571 = vmatpush.msra.mxu3 %v86_v55  ;;  %v327_v22 = vld [vmem:[#allocation5 + $0x860] sm:$0xff]  ;;  %v328_v23 = vld [vmem:[#allocation5 + $0x868] sm:$0xff]  ;;  %v257_v24 = vld [vmem:[#allocation5 + $0x630] sm:$0xff] }
  0x2c   :  { %530 = vmatpush.msra.mxu1 %v108_v57  ;;  %511 = vmatpush.msra.mxu0 %v83_v62  ;;  %v258_v25 = vld [vmem:[#allocation5 + $0x638] sm:$0xff]  ;;  %v303_v26 = vld [vmem:[#allocation5 + $0x7a0] sm:$0xff]  ;;  %v304_v27 = vld [vmem:[#allocation5 + $0x7a8] sm:$0xff] }
  0x2d   :  { %552 = vmatpush.msra.mxu2 %v61_v58  ;;  %572 = vmatpush.msra.mxu3 %v62_v59  ;;  %v233_v28 = vld [vmem:[#allocation5 + $0x570] sm:$0xff]  ;;  %v234_v29 = vld [vmem:[#allocation5 + $0x578] sm:$0xff]  ;;  %v279_v30 = vld [vmem:[#allocation5 + $0x6e0] sm:$0xff] }
  0x2e   :  { %531 = vmatpush.msra.mxu1 %v84_v63  ;;  %512 = vmatpush.msra.mxu0 %v59_v2  ;;  %v280_v31 = vld [vmem:[#allocation5 + $0x6e8] sm:$0xff]  ;;  %v209_v32 = vld [vmem:[#allocation5 + $0x4b0] sm:$0xff]  ;;  %v210_v33 = vld [vmem:[#allocation5 + $0x4b8] sm:$0xff] }
  0x2f   :  { %617 = vmatpush.msrb.mxu2 %v425_v60  ;;  %637 = vmatpush.msrb.mxu3 %v426_v61  ;;  %v255_v34 = vld [vmem:[#allocation5 + $0x620] sm:$0xff]  ;;  %v256_v35 = vld [vmem:[#allocation5 + $0x628] sm:$0xff]  ;;  %v185_v36 = vld [vmem:[#allocation5 + $0x3f0] sm:$0xff] }
  0x30   :  { %532 = vmatpush.msra.mxu1 %v60_v3  ;;  %577 = vmatpush.msrb.mxu0 %v423_v6  ;;  %v186_v37 = vld [vmem:[#allocation5 + $0x3f8] sm:$0xff]  ;;  %v231_v38 = vld [vmem:[#allocation5 + $0x560] sm:$0xff]  ;;  %v232_v39 = vld [vmem:[#allocation5 + $0x568] sm:$0xff] }
  0x31   :  { %618 = vmatpush.msrb.mxu2 %v401_v0  ;;  %638 = vmatpush.msrb.mxu3 %v402_v1  ;;  %v161_v40 = vld [vmem:[#allocation5 + $0x330] sm:$0xff]  ;;  %v162_v41 = vld [vmem:[#allocation5 + $0x338] sm:$0xff]  ;;  %v207_v42 = vld [vmem:[#allocation5 + $0x4a0] sm:$0xff] }
  0x32   :  { %597 = vmatpush.msrb.mxu1 %v424_v7  ;;  %578 = vmatpush.msrb.mxu0 %v399_v10  ;;  %v208_v43 = vld [vmem:[#allocation5 + $0x4a8] sm:$0xff]  ;;  %v137_v44 = vld [vmem:[#allocation5 + $0x270] sm:$0xff]  ;;  %v138_v45 = vld [vmem:[#allocation5 + $0x278] sm:$0xff] }
  0x33   :  { %619 = vmatpush.msrb.mxu2 %v377_v4  ;;  %639 = vmatpush.msrb.mxu3 %v378_v5  ;;  %v183_v46 = vld [vmem:[#allocation5 + $0x3e0] sm:$0xff]  ;;  %v184_v47 = vld [vmem:[#allocation5 + $0x3e8] sm:$0xff]  ;;  %v113_v48 = vld [vmem:[#allocation5 + $0x1b0] sm:$0xff] }
  0x34   :  { %598 = vmatpush.msrb.mxu1 %v400_v11  ;;  %579 = vmatpush.msrb.mxu0 %v375_v14  ;;  %v114_v49 = vld [vmem:[#allocation5 + $0x1b8] sm:$0xff]  ;;  %v159_v50 = vld [vmem:[#allocation5 + $0x320] sm:$0xff]  ;;  %v160_v51 = vld [vmem:[#allocation5 + $0x328] sm:$0xff] }
  0x35   :  { %620 = vmatpush.msrb.mxu2 %v353_v8  ;;  %640 = vmatpush.msrb.mxu3 %v354_v9  ;;  %v89_v52 = vld [vmem:[#allocation5 + $0xf0] sm:$0xff]  ;;  %v90_v53 = vld [vmem:[#allocation5 + $0xf8] sm:$0xff]  ;;  %v135_v54 = vld [vmem:[#allocation5 + $0x260] sm:$0xff] }
  0x36   :  { %599 = vmatpush.msrb.mxu1 %v376_v15  ;;  %580 = vmatpush.msrb.mxu0 %v351_v18  ;;  %v136_v55 = vld [vmem:[#allocation5 + $0x268] sm:$0xff]  ;;  %v65_v56 = vld [vmem:[#allocation5 + $0x30] sm:$0xff]  ;;  %v66_v57 = vld [vmem:[#allocation5 + $0x38] sm:$0xff] }
  0x37   :  { %621 = vmatpush.msrb.mxu2 %v329_v12  ;;  %641 = vmatpush.msrb.mxu3 %v330_v13  ;;  %v1163_v58 = vld [vmem:[#allocation2] sm:$0xff]  ;;  %v429_v59 = vld [vmem:[#allocation5 + $0xb90] sm:$0xff]  ;;  %v111_v61 = vld [vmem:[#allocation5 + $0x1a0] sm:$0xff] }
  0x38   :  { %600 = vmatpush.msrb.mxu1 %v352_v19  ;;  %581 = vmatpush.msrb.mxu0 %v327_v22  ;;  %v430_v60 = vld [vmem:[#allocation5 + $0xb98] sm:$0xff]  ;;  %v112_v62 = vld [vmem:[#allocation5 + $0x1a8] sm:$0xff]  ;;  %v405_v63 = vld [vmem:[#allocation5 + $0xad0] sm:$0xff] }
  0x39   :  { %622 = vmatpush.msrb.mxu2 %v305_v16  ;;  %642 = vmatpush.msrb.mxu3 %v306_v17  ;;  %v406_v0 = vld [vmem:[#allocation5 + $0xad8] sm:$0xff]  ;;  %v87_v1 = vld [vmem:[#allocation5 + $0xe0] sm:$0xff]  ;;  %v88_v2 = vld [vmem:[#allocation5 + $0xe8] sm:$0xff] }
  0x3a   :  { %601 = vmatpush.msrb.mxu1 %v328_v23  ;;  %582 = vmatpush.msrb.mxu0 %v303_v26  ;;  %v381_v3 = vld [vmem:[#allocation5 + $0xa10] sm:$0xff]  ;;  %v382_v4 = vld [vmem:[#allocation5 + $0xa18] sm:$0xff]  ;;  %v63_v5 = vld [vmem:[#allocation5 + $0x20] sm:$0xff] }
  0x3b   :  { %623 = vmatpush.msrb.mxu2 %v281_v20  ;;  %643 = vmatpush.msrb.mxu3 %v282_v21  ;;  %v64_v6 = vld [vmem:[#allocation5 + $0x28] sm:$0xff]  ;;  %v427_v7 = vld [vmem:[#allocation5 + $0xb80] sm:$0xff]  ;;  %v357_v9 = vld [vmem:[#allocation5 + $0x950] sm:$0xff] }
  0x3c   :  { %602 = vmatpush.msrb.mxu1 %v304_v27  ;;  %583 = vmatpush.msrb.mxu0 %v279_v30  ;;  %v428_v8 = vld [vmem:[#allocation5 + $0xb88] sm:$0xff]  ;;  %v358_v10 = vld [vmem:[#allocation5 + $0x958] sm:$0xff]  ;;  %v403_v11 = vld [vmem:[#allocation5 + $0xac0] sm:$0xff] }
  0x3d   :  { %624 = vmatpush.msrb.mxu2 %v257_v24  ;;  %644 = vmatpush.msrb.mxu3 %v258_v25  ;;  %v404_v12 = vld [vmem:[#allocation5 + $0xac8] sm:$0xff]  ;;  %v333_v13 = vld [vmem:[#allocation5 + $0x890] sm:$0xff]  ;;  %v334_v14 = vld [vmem:[#allocation5 + $0x898] sm:$0xff] }
  0x3e   :  { %603 = vmatpush.msrb.mxu1 %v280_v31  ;;  %584 = vmatpush.msrb.mxu0 %v255_v34  ;;  %v379_v15 = vld [vmem:[#allocation5 + $0xa00] sm:$0xff]  ;;  %v380_v16 = vld [vmem:[#allocation5 + $0xa08] sm:$0xff]  ;;  %v309_v17 = vld [vmem:[#allocation5 + $0x7d0] sm:$0xff] }
  0x3f   :  { %625 = vmatpush.msrb.mxu2 %v233_v28  ;;  %645 = vmatpush.msrb.mxu3 %v234_v29  ;;  %v310_v18 = vld [vmem:[#allocation5 + $0x7d8] sm:$0xff]  ;;  %v355_v19 = vld [vmem:[#allocation5 + $0x940] sm:$0xff]  ;;  %v356_v20 = vld [vmem:[#allocation5 + $0x948] sm:$0xff] }
  0x40   :  { %604 = vmatpush.msrb.mxu1 %v256_v35  ;;  %585 = vmatpush.msrb.mxu0 %v231_v38  ;;  %v285_v21 = vld [vmem:[#allocation5 + $0x710] sm:$0xff]  ;;  %v286_v22 = vld [vmem:[#allocation5 + $0x718] sm:$0xff]  ;;  %v331_v23 = vld [vmem:[#allocation5 + $0x880] sm:$0xff] }
  0x41   :  { %626 = vmatpush.msrb.mxu2 %v209_v32  ;;  %646 = vmatpush.msrb.mxu3 %v210_v33  ;;  %v332_v24 = vld [vmem:[#allocation5 + $0x888] sm:$0xff]  ;;  %v261_v25 = vld [vmem:[#allocation5 + $0x650] sm:$0xff]  ;;  %v262_v26 = vld [vmem:[#allocation5 + $0x658] sm:$0xff] }
  0x42   :  { %605 = vmatpush.msrb.mxu1 %v232_v39  ;;  %586 = vmatpush.msrb.mxu0 %v207_v42  ;;  %v307_v27 = vld [vmem:[#allocation5 + $0x7c0] sm:$0xff]  ;;  %v308_v28 = vld [vmem:[#allocation5 + $0x7c8] sm:$0xff]  ;;  %v237_v29 = vld [vmem:[#allocation5 + $0x590] sm:$0xff] }
  0x43   :  { %627 = vmatpush.msrb.mxu2 %v185_v36  ;;  %647 = vmatpush.msrb.mxu3 %v186_v37  ;;  %v238_v30 = vld [vmem:[#allocation5 + $0x598] sm:$0xff]  ;;  %v283_v31 = vld [vmem:[#allocation5 + $0x700] sm:$0xff]  ;;  %v284_v32 = vld [vmem:[#allocation5 + $0x708] sm:$0xff] }
  0x44   :  { %606 = vmatpush.msrb.mxu1 %v208_v43  ;;  %587 = vmatpush.msrb.mxu0 %v183_v46  ;;  %v213_v33 = vld [vmem:[#allocation5 + $0x4d0] sm:$0xff]  ;;  %v214_v34 = vld [vmem:[#allocation5 + $0x4d8] sm:$0xff]  ;;  %v259_v35 = vld [vmem:[#allocation5 + $0x640] sm:$0xff] }
  0x45   :  { %628 = vmatpush.msrb.mxu2 %v161_v40  ;;  %648 = vmatpush.msrb.mxu3 %v162_v41  ;;  %v260_v36 = vld [vmem:[#allocation5 + $0x648] sm:$0xff]  ;;  %v189_v37 = vld [vmem:[#allocation5 + $0x410] sm:$0xff]  ;;  %v190_v38 = vld [vmem:[#allocation5 + $0x418] sm:$0xff] }
  0x46   :  { %607 = vmatpush.msrb.mxu1 %v184_v47  ;;  %588 = vmatpush.msrb.mxu0 %v159_v50  ;;  %v235_v39 = vld [vmem:[#allocation5 + $0x580] sm:$0xff]  ;;  %v236_v40 = vld [vmem:[#allocation5 + $0x588] sm:$0xff]  ;;  %v165_v41 = vld [vmem:[#allocation5 + $0x350] sm:$0xff] }
  0x47   :  { %629 = vmatpush.msrb.mxu2 %v137_v44  ;;  %649 = vmatpush.msrb.mxu3 %v138_v45  ;;  %v166_v42 = vld [vmem:[#allocation5 + $0x358] sm:$0xff]  ;;  %v211_v43 = vld [vmem:[#allocation5 + $0x4c0] sm:$0xff]  ;;  %v212_v44 = vld [vmem:[#allocation5 + $0x4c8] sm:$0xff] }
  0x48   :  { %608 = vmatpush.msrb.mxu1 %v160_v51  ;;  %589 = vmatpush.msrb.mxu0 %v135_v54  ;;  %v141_v45 = vld [vmem:[#allocation5 + $0x290] sm:$0xff]  ;;  %v142_v46 = vld [vmem:[#allocation5 + $0x298] sm:$0xff]  ;;  %v187_v47 = vld [vmem:[#allocation5 + $0x400] sm:$0xff] }
  0x49   :  { %630 = vmatpush.msrb.mxu2 %v113_v48  ;;  %650 = vmatpush.msrb.mxu3 %v114_v49  ;;  %v188_v48 = vld [vmem:[#allocation5 + $0x408] sm:$0xff]  ;;  %v117_v49 = vld [vmem:[#allocation5 + $0x1d0] sm:$0xff]  ;;  %v118_v50 = vld [vmem:[#allocation5 + $0x1d8] sm:$0xff] }
  0x4a   :  { %609 = vmatpush.msrb.mxu1 %v136_v55  ;;  %553 = vmatmul.f32.vlgmr.msra.gmra.mxu2 %v1163_v58  ;;  %v163_v51 = vld [vmem:[#allocation5 + $0x340] sm:$0xff]  ;;  %v94_v54 = vld [vmem:[#allocation5 + $0x118] sm:$0xff] }
  0x4b   :  { %631 = vmatpush.msrb.mxu2 %v89_v52  ;;  %651 = vmatpush.msrb.mxu3 %v90_v53  ;;  %v164_v52 = vld [vmem:[#allocation5 + $0x348] sm:$0xff]  ;;  %v93_v53 = vld [vmem:[#allocation5 + $0x110] sm:$0xff]  ;;  %v139_v55 = vld [vmem:[#allocation5 + $0x280] sm:$0xff] }
  0x4c   :  { %573 = vmatmul.f32.vlgmr.msra.gmra.mxu3 %v1163_v58  ;;  %590 = vmatpush.msrb.mxu0 %v111_v61  ;;  %v434_v61 = vld [vmem:[#allocation5 + $0xbb8] sm:$0xff] }
  0x4d   :  { %632 = vmatpush.msrb.mxu2 %v65_v56  ;;  %652 = vmatpush.msrb.mxu3 %v66_v57  ;;  %v140_v56 = vld [vmem:[#allocation5 + $0x288] sm:$0xff]  ;;  %v69_v57 = vld [vmem:[#allocation5 + $0x50] sm:$0xff] }
  0x4e   :  { %610 = vmatpush.msrb.mxu1 %v112_v62  ;;  %591 = vmatpush.msrb.mxu0 %v87_v1  ;;  %v115_v62 = vld [vmem:[#allocation5 + $0x1c0] sm:$0xff]  ;;  %v410_v1 = vld [vmem:[#allocation5 + $0xaf8] sm:$0xff] }
  0x4f   :  { %697 = vmatpush.msra.mxu2 %v429_v59  ;;  %717 = vmatpush.msra.mxu3 %v430_v60  ;;  %v70_v59 = vld [vmem:[#allocation5 + $0x58] sm:$0xff]  ;;  %v433_v60 = vld [vmem:[#allocation5 + $0xbb0] sm:$0xff] }
  0x50   :  { %611 = vmatpush.msrb.mxu1 %v88_v2  ;;  %592 = vmatpush.msrb.mxu0 %v63_v5  ;;  %v91_v2 = vld [vmem:[#allocation5 + $0x100] sm:$0xff]  ;;  %v386_v5 = vld [vmem:[#allocation5 + $0xa38] sm:$0xff] }
  0x51   :  { %698 = vmatpush.msra.mxu2 %v405_v63  ;;  %718 = vmatpush.msra.mxu3 %v406_v0  ;;  %v116_v63 = vld [vmem:[#allocation5 + $0x1c8] sm:$0xff]  ;;  %v409_v0 = vld [vmem:[#allocation5 + $0xaf0] sm:$0xff] }
  0x52   :  { %612 = vmatpush.msrb.mxu1 %v64_v6  ;;  %513 = vmatmul.f32.vlgmr.msra.gmra.mxu0 %v1163_v58  ;;  %v67_v6 = vld [vmem:[#allocation5 + $0x40] sm:$0xff] }
  0x53   :  { %699 = vmatpush.msra.mxu2 %v381_v3  ;;  %719 = vmatpush.msra.mxu3 %v382_v4  ;;  %v92_v3 = vld [vmem:[#allocation5 + $0x108] sm:$0xff]  ;;  %v385_v4 = vld [vmem:[#allocation5 + $0xa30] sm:$0xff] }
  0x54   :  { %533 = vmatmul.f32.vlgmr.msra.gmra.mxu1 %v1163_v58  ;;  %657 = vmatpush.msra.mxu0 %v427_v7  ;;  %v68_v7 = vld [vmem:[#allocation5 + $0x48] sm:$0xff] }
  0x55   :  { %677 = vmatpush.msra.mxu1 %v428_v8  ;;  %700 = vmatpush.msra.mxu2 %v357_v9  ;;  %v431_v8 = vld [vmem:[#allocation5 + $0xba0] sm:$0xff]  ;;  %v432_v9 = vld [vmem:[#allocation5 + $0xba8] sm:$0xff] }
  0x56   :  { %720 = vmatpush.msra.mxu3 %v358_v10  ;;  %658 = vmatpush.msra.mxu0 %v403_v11  ;;  %v361_v10 = vld [vmem:[#allocation5 + $0x970] sm:$0xff]  ;;  %v362_v11 = vld [vmem:[#allocation5 + $0x978] sm:$0xff] }
  0x57   :  { %678 = vmatpush.msra.mxu1 %v404_v12  ;;  %701 = vmatpush.msra.mxu2 %v333_v13  ;;  %v407_v12 = vld [vmem:[#allocation5 + $0xae0] sm:$0xff]  ;;  %v408_v13 = vld [vmem:[#allocation5 + $0xae8] sm:$0xff] }
  0x58   :  { %721 = vmatpush.msra.mxu3 %v334_v14  ;;  %659 = vmatpush.msra.mxu0 %v379_v15  ;;  %v337_v14 = vld [vmem:[#allocation5 + $0x8b0] sm:$0xff]  ;;  %v338_v15 = vld [vmem:[#allocation5 + $0x8b8] sm:$0xff] }
  0x59   :  { %679 = vmatpush.msra.mxu1 %v380_v16  ;;  %702 = vmatpush.msra.mxu2 %v309_v17  ;;  %v383_v16 = vld [vmem:[#allocation5 + $0xa20] sm:$0xff]  ;;  %v384_v17 = vld [vmem:[#allocation5 + $0xa28] sm:$0xff] }
  0x5a   :  { %722 = vmatpush.msra.mxu3 %v310_v18  ;;  %660 = vmatpush.msra.mxu0 %v355_v19  ;;  %v313_v18 = vld [vmem:[#allocation5 + $0x7f0] sm:$0xff]  ;;  %v314_v19 = vld [vmem:[#allocation5 + $0x7f8] sm:$0xff] }
  0x5b   :  { %680 = vmatpush.msra.mxu1 %v356_v20  ;;  %703 = vmatpush.msra.mxu2 %v285_v21  ;;  %v359_v20 = vld [vmem:[#allocation5 + $0x960] sm:$0xff]  ;;  %v360_v21 = vld [vmem:[#allocation5 + $0x968] sm:$0xff] }
  0x5c   :  { %723 = vmatpush.msra.mxu3 %v286_v22  ;;  %661 = vmatpush.msra.mxu0 %v331_v23  ;;  %v289_v22 = vld [vmem:[#allocation5 + $0x730] sm:$0xff]  ;;  %v290_v23 = vld [vmem:[#allocation5 + $0x738] sm:$0xff] }
  0x5d   :  { %681 = vmatpush.msra.mxu1 %v332_v24  ;;  %704 = vmatpush.msra.mxu2 %v261_v25  ;;  %v335_v24 = vld [vmem:[#allocation5 + $0x8a0] sm:$0xff]  ;;  %v336_v25 = vld [vmem:[#allocation5 + $0x8a8] sm:$0xff] }
  0x5e   :  { %724 = vmatpush.msra.mxu3 %v262_v26  ;;  %662 = vmatpush.msra.mxu0 %v307_v27  ;;  %v265_v26 = vld [vmem:[#allocation5 + $0x670] sm:$0xff]  ;;  %v266_v27 = vld [vmem:[#allocation5 + $0x678] sm:$0xff] }
  0x5f   :  { %682 = vmatpush.msra.mxu1 %v308_v28  ;;  %705 = vmatpush.msra.mxu2 %v237_v29  ;;  %v311_v28 = vld [vmem:[#allocation5 + $0x7e0] sm:$0xff]  ;;  %v312_v29 = vld [vmem:[#allocation5 + $0x7e8] sm:$0xff] }
  0x60   :  { %725 = vmatpush.msra.mxu3 %v238_v30  ;;  %663 = vmatpush.msra.mxu0 %v283_v31  ;;  %v241_v30 = vld [vmem:[#allocation5 + $0x5b0] sm:$0xff]  ;;  %v242_v31 = vld [vmem:[#allocation5 + $0x5b8] sm:$0xff] }
  0x61   :  { %683 = vmatpush.msra.mxu1 %v284_v32  ;;  %706 = vmatpush.msra.mxu2 %v213_v33  ;;  %v287_v32 = vld [vmem:[#allocation5 + $0x720] sm:$0xff]  ;;  %v288_v33 = vld [vmem:[#allocation5 + $0x728] sm:$0xff] }
  0x62   :  { %726 = vmatpush.msra.mxu3 %v214_v34  ;;  %664 = vmatpush.msra.mxu0 %v259_v35  ;;  %v217_v34 = vld [vmem:[#allocation5 + $0x4f0] sm:$0xff]  ;;  %v218_v35 = vld [vmem:[#allocation5 + $0x4f8] sm:$0xff] }
  0x63   :  { %684 = vmatpush.msra.mxu1 %v260_v36  ;;  %707 = vmatpush.msra.mxu2 %v189_v37  ;;  %v263_v36 = vld [vmem:[#allocation5 + $0x660] sm:$0xff]  ;;  %v264_v37 = vld [vmem:[#allocation5 + $0x668] sm:$0xff] }
  0x64   :  { %727 = vmatpush.msra.mxu3 %v190_v38  ;;  %665 = vmatpush.msra.mxu0 %v235_v39  ;;  %v193_v38 = vld [vmem:[#allocation5 + $0x430] sm:$0xff]  ;;  %v194_v39 = vld [vmem:[#allocation5 + $0x438] sm:$0xff] }
  0x65   :  { %685 = vmatpush.msra.mxu1 %v236_v40  ;;  %708 = vmatpush.msra.mxu2 %v165_v41  ;;  %v239_v40 = vld [vmem:[#allocation5 + $0x5a0] sm:$0xff]  ;;  %v240_v41 = vld [vmem:[#allocation5 + $0x5a8] sm:$0xff] }
  0x66   :  { %728 = vmatpush.msra.mxu3 %v166_v42  ;;  %666 = vmatpush.msra.mxu0 %v211_v43  ;;  %v169_v42 = vld [vmem:[#allocation5 + $0x370] sm:$0xff]  ;;  %v170_v43 = vld [vmem:[#allocation5 + $0x378] sm:$0xff] }
  0x67   :  { %686 = vmatpush.msra.mxu1 %v212_v44  ;;  %709 = vmatpush.msra.mxu2 %v141_v45  ;;  %v215_v44 = vld [vmem:[#allocation5 + $0x4e0] sm:$0xff]  ;;  %v216_v45 = vld [vmem:[#allocation5 + $0x4e8] sm:$0xff] }
  0x68   :  { %729 = vmatpush.msra.mxu3 %v142_v46  ;;  %667 = vmatpush.msra.mxu0 %v187_v47  ;;  %v145_v46 = vld [vmem:[#allocation5 + $0x2b0] sm:$0xff]  ;;  %v146_v47 = vld [vmem:[#allocation5 + $0x2b8] sm:$0xff] }
  0x69   :  { %687 = vmatpush.msra.mxu1 %v188_v48  ;;  %710 = vmatpush.msra.mxu2 %v117_v49  ;;  %v191_v48 = vld [vmem:[#allocation5 + $0x420] sm:$0xff]  ;;  %v192_v49 = vld [vmem:[#allocation5 + $0x428] sm:$0xff] }
  0x6a   :  { %730 = vmatpush.msra.mxu3 %v118_v50  ;;  %668 = vmatpush.msra.mxu0 %v163_v51  ;;  %v121_v50 = vld [vmem:[#allocation5 + $0x1f0] sm:$0xff]  ;;  %v122_v51 = vld [vmem:[#allocation5 + $0x1f8] sm:$0xff] }
  0x6b   :  { %688 = vmatpush.msra.mxu1 %v164_v52  ;;  %711 = vmatpush.msra.mxu2 %v93_v53  ;;  %v167_v52 = vld [vmem:[#allocation5 + $0x360] sm:$0xff]  ;;  %v168_v53 = vld [vmem:[#allocation5 + $0x368] sm:$0xff] }
  0x6c   :  { %731 = vmatpush.msra.mxu3 %v94_v54  ;;  %669 = vmatpush.msra.mxu0 %v139_v55  ;;  %v97_v54 = vld [vmem:[#allocation5 + $0x130] sm:$0xff]  ;;  %v98_v55 = vld [vmem:[#allocation5 + $0x138] sm:$0xff] }
  0x6d   :  { %689 = vmatpush.msra.mxu1 %v140_v56  ;;  %712 = vmatpush.msra.mxu2 %v69_v57  ;;  %v143_v56 = vld [vmem:[#allocation5 + $0x2a0] sm:$0xff]  ;;  %v144_v57 = vld [vmem:[#allocation5 + $0x2a8] sm:$0xff] }
  0x6e   :  { %732 = vmatpush.msra.mxu3 %v70_v59  ;;  %633 = vmatmul.f32.vlgmr.msrb.gmra.mxu2 %v1163_v58  ;;  %v73_v59 = vld [vmem:[#allocation5 + $0x70] sm:$0xff] }
  0x6f   :  { %653 = vmatmul.f32.vlgmr.msrb.gmra.mxu3 %v1163_v58  ;;  %777 = vmatpush.msrb.mxu2 %v433_v60  ;;  %v74_v60 = vld [vmem:[#allocation5 + $0x78] sm:$0xff] }
  0x70   :  { %797 = vmatpush.msrb.mxu3 %v434_v61  ;;  %670 = vmatpush.msra.mxu0 %v115_v62  ;;  %v437_v61 = vld [vmem:[#allocation5 + $0xbd0] sm:$0xff]  ;;  %v438_v62 = vld [vmem:[#allocation5 + $0xbd8] sm:$0xff] }
  0x71   :  { %690 = vmatpush.msra.mxu1 %v116_v63  ;;  %778 = vmatpush.msrb.mxu2 %v409_v0  ;;  %v119_v63 = vld [vmem:[#allocation5 + $0x1e0] sm:$0xff]  ;;  %v120_v0 = vld [vmem:[#allocation5 + $0x1e8] sm:$0xff] }
  0x72   :  { %798 = vmatpush.msrb.mxu3 %v410_v1  ;;  %671 = vmatpush.msra.mxu0 %v91_v2  ;;  %v413_v1 = vld [vmem:[#allocation5 + $0xb10] sm:$0xff]  ;;  %v414_v2 = vld [vmem:[#allocation5 + $0xb18] sm:$0xff] }
  0x73   :  { %691 = vmatpush.msra.mxu1 %v92_v3  ;;  %779 = vmatpush.msrb.mxu2 %v385_v4  ;;  %v95_v3 = vld [vmem:[#allocation5 + $0x120] sm:$0xff]  ;;  %v96_v4 = vld [vmem:[#allocation5 + $0x128] sm:$0xff] }
  0x74   :  { %799 = vmatpush.msrb.mxu3 %v386_v5  ;;  %672 = vmatpush.msra.mxu0 %v67_v6  ;;  %v389_v5 = vld [vmem:[#allocation5 + $0xa50] sm:$0xff]  ;;  %v390_v6 = vld [vmem:[#allocation5 + $0xa58] sm:$0xff] }
  0x75   :  { %692 = vmatpush.msra.mxu1 %v68_v7  ;;  %593 = vmatmul.f32.vlgmr.msrb.gmra.mxu0 %v1163_v58  ;;  %v71_v7 = vld [vmem:[#allocation5 + $0x60] sm:$0xff] }
  0x76   :  { %613 = vmatmul.f32.vlgmr.msrb.gmra.mxu1 %v1163_v58  ;;  %737 = vmatpush.msrb.mxu0 %v431_v8  ;;  %v72_v8 = vld [vmem:[#allocation5 + $0x68] sm:$0xff] }
  0x77   :  { %757 = vmatpush.msrb.mxu1 %v432_v9  ;;  %780 = vmatpush.msrb.mxu2 %v361_v10  ;;  %v435_v9 = vld [vmem:[#allocation5 + $0xbc0] sm:$0xff]  ;;  %v436_v10 = vld [vmem:[#allocation5 + $0xbc8] sm:$0xff] }
  0x78   :  { %800 = vmatpush.msrb.mxu3 %v362_v11  ;;  %738 = vmatpush.msrb.mxu0 %v407_v12  ;;  %v365_v11 = vld [vmem:[#allocation5 + $0x990] sm:$0xff]  ;;  %v366_v12 = vld [vmem:[#allocation5 + $0x998] sm:$0xff] }
  0x79   :  { %758 = vmatpush.msrb.mxu1 %v408_v13  ;;  %781 = vmatpush.msrb.mxu2 %v337_v14  ;;  %v411_v13 = vld [vmem:[#allocation5 + $0xb00] sm:$0xff]  ;;  %v412_v14 = vld [vmem:[#allocation5 + $0xb08] sm:$0xff] }
  0x7a   :  { %801 = vmatpush.msrb.mxu3 %v338_v15  ;;  %739 = vmatpush.msrb.mxu0 %v383_v16  ;;  %v341_v15 = vld [vmem:[#allocation5 + $0x8d0] sm:$0xff]  ;;  %v342_v16 = vld [vmem:[#allocation5 + $0x8d8] sm:$0xff] }
  0x7b   :  { %759 = vmatpush.msrb.mxu1 %v384_v17  ;;  %782 = vmatpush.msrb.mxu2 %v313_v18  ;;  %v387_v17 = vld [vmem:[#allocation5 + $0xa40] sm:$0xff]  ;;  %v388_v18 = vld [vmem:[#allocation5 + $0xa48] sm:$0xff] }
  0x7c   :  { %802 = vmatpush.msrb.mxu3 %v314_v19  ;;  %740 = vmatpush.msrb.mxu0 %v359_v20  ;;  %v317_v19 = vld [vmem:[#allocation5 + $0x810] sm:$0xff]  ;;  %v318_v20 = vld [vmem:[#allocation5 + $0x818] sm:$0xff] }
  0x7d   :  { %760 = vmatpush.msrb.mxu1 %v360_v21  ;;  %783 = vmatpush.msrb.mxu2 %v289_v22  ;;  %v363_v21 = vld [vmem:[#allocation5 + $0x980] sm:$0xff]  ;;  %v364_v22 = vld [vmem:[#allocation5 + $0x988] sm:$0xff] }
  0x7e   :  { %803 = vmatpush.msrb.mxu3 %v290_v23  ;;  %741 = vmatpush.msrb.mxu0 %v335_v24  ;;  %v293_v23 = vld [vmem:[#allocation5 + $0x750] sm:$0xff]  ;;  %v294_v24 = vld [vmem:[#allocation5 + $0x758] sm:$0xff] }
  0x7f   :  { %761 = vmatpush.msrb.mxu1 %v336_v25  ;;  %784 = vmatpush.msrb.mxu2 %v265_v26  ;;  %v339_v25 = vld [vmem:[#allocation5 + $0x8c0] sm:$0xff]  ;;  %v340_v26 = vld [vmem:[#allocation5 + $0x8c8] sm:$0xff] }
  0x80   :  { %804 = vmatpush.msrb.mxu3 %v266_v27  ;;  %742 = vmatpush.msrb.mxu0 %v311_v28  ;;  %v269_v27 = vld [vmem:[#allocation5 + $0x690] sm:$0xff]  ;;  %v270_v28 = vld [vmem:[#allocation5 + $0x698] sm:$0xff] }
  0x81   :  { %762 = vmatpush.msrb.mxu1 %v312_v29  ;;  %785 = vmatpush.msrb.mxu2 %v241_v30  ;;  %v315_v29 = vld [vmem:[#allocation5 + $0x800] sm:$0xff]  ;;  %v316_v30 = vld [vmem:[#allocation5 + $0x808] sm:$0xff] }
  0x82   :  { %805 = vmatpush.msrb.mxu3 %v242_v31  ;;  %743 = vmatpush.msrb.mxu0 %v287_v32  ;;  %v245_v31 = vld [vmem:[#allocation5 + $0x5d0] sm:$0xff]  ;;  %v246_v32 = vld [vmem:[#allocation5 + $0x5d8] sm:$0xff] }
  0x83   :  { %763 = vmatpush.msrb.mxu1 %v288_v33  ;;  %786 = vmatpush.msrb.mxu2 %v217_v34  ;;  %v291_v33 = vld [vmem:[#allocation5 + $0x740] sm:$0xff]  ;;  %v292_v34 = vld [vmem:[#allocation5 + $0x748] sm:$0xff] }
  0x84   :  { %806 = vmatpush.msrb.mxu3 %v218_v35  ;;  %744 = vmatpush.msrb.mxu0 %v263_v36  ;;  %v221_v35 = vld [vmem:[#allocation5 + $0x510] sm:$0xff]  ;;  %v222_v36 = vld [vmem:[#allocation5 + $0x518] sm:$0xff] }
  0x85   :  { %764 = vmatpush.msrb.mxu1 %v264_v37  ;;  %787 = vmatpush.msrb.mxu2 %v193_v38  ;;  %v267_v37 = vld [vmem:[#allocation5 + $0x680] sm:$0xff]  ;;  %v268_v38 = vld [vmem:[#allocation5 + $0x688] sm:$0xff] }
  0x86   :  { %807 = vmatpush.msrb.mxu3 %v194_v39  ;;  %745 = vmatpush.msrb.mxu0 %v239_v40  ;;  %v197_v39 = vld [vmem:[#allocation5 + $0x450] sm:$0xff]  ;;  %v198_v40 = vld [vmem:[#allocation5 + $0x458] sm:$0xff] }
  0x87   :  { %765 = vmatpush.msrb.mxu1 %v240_v41  ;;  %788 = vmatpush.msrb.mxu2 %v169_v42  ;;  %v243_v41 = vld [vmem:[#allocation5 + $0x5c0] sm:$0xff]  ;;  %v244_v42 = vld [vmem:[#allocation5 + $0x5c8] sm:$0xff] }
  0x88   :  { %808 = vmatpush.msrb.mxu3 %v170_v43  ;;  %746 = vmatpush.msrb.mxu0 %v215_v44  ;;  %v173_v43 = vld [vmem:[#allocation5 + $0x390] sm:$0xff]  ;;  %v174_v44 = vld [vmem:[#allocation5 + $0x398] sm:$0xff] }
  0x89   :  { %766 = vmatpush.msrb.mxu1 %v216_v45  ;;  %789 = vmatpush.msrb.mxu2 %v145_v46  ;;  %v219_v45 = vld [vmem:[#allocation5 + $0x500] sm:$0xff]  ;;  %v220_v46 = vld [vmem:[#allocation5 + $0x508] sm:$0xff] }
  0x8a   :  { %809 = vmatpush.msrb.mxu3 %v146_v47  ;;  %747 = vmatpush.msrb.mxu0 %v191_v48  ;;  %v149_v47 = vld [vmem:[#allocation5 + $0x2d0] sm:$0xff]  ;;  %v150_v48 = vld [vmem:[#allocation5 + $0x2d8] sm:$0xff] }
  0x8b   :  { %767 = vmatpush.msrb.mxu1 %v192_v49  ;;  %790 = vmatpush.msrb.mxu2 %v121_v50  ;;  %v195_v49 = vld [vmem:[#allocation5 + $0x440] sm:$0xff]  ;;  %v196_v50 = vld [vmem:[#allocation5 + $0x448] sm:$0xff] }
  0x8c   :  { %810 = vmatpush.msrb.mxu3 %v122_v51  ;;  %748 = vmatpush.msrb.mxu0 %v167_v52  ;;  %v125_v51 = vld [vmem:[#allocation5 + $0x210] sm:$0xff]  ;;  %v126_v52 = vld [vmem:[#allocation5 + $0x218] sm:$0xff] }
  0x8d   :  { %768 = vmatpush.msrb.mxu1 %v168_v53  ;;  %791 = vmatpush.msrb.mxu2 %v97_v54  ;;  %v171_v53 = vld [vmem:[#allocation5 + $0x380] sm:$0xff]  ;;  %v172_v54 = vld [vmem:[#allocation5 + $0x388] sm:$0xff] }
  0x8e   :  { %811 = vmatpush.msrb.mxu3 %v98_v55  ;;  %749 = vmatpush.msrb.mxu0 %v143_v56  ;;  %v101_v55 = vld [vmem:[#allocation5 + $0x150] sm:$0xff]  ;;  %v102_v56 = vld [vmem:[#allocation5 + $0x158] sm:$0xff] }
  0x8f   :  { %769 = vmatpush.msrb.mxu1 %v144_v57  ;;  %792 = vmatpush.msrb.mxu2 %v73_v59  ;;  %v147_v57 = vld [vmem:[#allocation5 + $0x2c0] sm:$0xff]  ;;  %v148_v59 = vld [vmem:[#allocation5 + $0x2c8] sm:$0xff] }
  0x90   :  { %812 = vmatpush.msrb.mxu3 %v74_v60  ;;  %713 = vmatmul.f32.vlgmr.msra.gmra.mxu2 %v1163_v58  ;;  %v77_v60 = vld [vmem:[#allocation5 + $0x90] sm:$0xff] }
  0x91   :  { %733 = vmatmul.f32.vlgmr.msra.gmra.mxu3 %v1163_v58  ;;  %857 = vmatpush.msra.mxu2 %v437_v61  ;;  %v78_v61 = vld [vmem:[#allocation5 + $0x98] sm:$0xff] }
  0x92   :  { %877 = vmatpush.msra.mxu3 %v438_v62  ;;  %750 = vmatpush.msrb.mxu0 %v119_v63  ;;  %v441_v62 = vld [vmem:[#allocation5 + $0xbf0] sm:$0xff]  ;;  %v442_v63 = vld [vmem:[#allocation5 + $0xbf8] sm:$0xff] }
  0x93   :  { %770 = vmatpush.msrb.mxu1 %v120_v0  ;;  %858 = vmatpush.msra.mxu2 %v413_v1  ;;  %v123_v0 = vld [vmem:[#allocation5 + $0x200] sm:$0xff]  ;;  %v124_v1 = vld [vmem:[#allocation5 + $0x208] sm:$0xff] }
  0x94   :  { %878 = vmatpush.msra.mxu3 %v414_v2  ;;  %751 = vmatpush.msrb.mxu0 %v95_v3  ;;  %v417_v2 = vld [vmem:[#allocation5 + $0xb30] sm:$0xff]  ;;  %v418_v3 = vld [vmem:[#allocation5 + $0xb38] sm:$0xff] }
  0x95   :  { %771 = vmatpush.msrb.mxu1 %v96_v4  ;;  %859 = vmatpush.msra.mxu2 %v389_v5  ;;  %v99_v4 = vld [vmem:[#allocation5 + $0x140] sm:$0xff]  ;;  %v100_v5 = vld [vmem:[#allocation5 + $0x148] sm:$0xff] }
  0x96   :  { %879 = vmatpush.msra.mxu3 %v390_v6  ;;  %752 = vmatpush.msrb.mxu0 %v71_v7  ;;  %v393_v6 = vld [vmem:[#allocation5 + $0xa70] sm:$0xff]  ;;  %v394_v7 = vld [vmem:[#allocation5 + $0xa78] sm:$0xff] }
  0x97   :  { %772 = vmatpush.msrb.mxu1 %v72_v8  ;;  %673 = vmatmul.f32.vlgmr.msra.gmra.mxu0 %v1163_v58  ;;  %v75_v8 = vld [vmem:[#allocation5 + $0x80] sm:$0xff] }
  0x98   :  { %693 = vmatmul.f32.vlgmr.msra.gmra.mxu1 %v1163_v58  ;;  %817 = vmatpush.msra.mxu0 %v435_v9  ;;  %v76_v9 = vld [vmem:[#allocation5 + $0x88] sm:$0xff] }
  0x99   :  { %837 = vmatpush.msra.mxu1 %v436_v10  ;;  %860 = vmatpush.msra.mxu2 %v365_v11  ;;  %v439_v10 = vld [vmem:[#allocation5 + $0xbe0] sm:$0xff]  ;;  %v440_v11 = vld [vmem:[#allocation5 + $0xbe8] sm:$0xff] }
  0x9a   :  { %880 = vmatpush.msra.mxu3 %v366_v12  ;;  %818 = vmatpush.msra.mxu0 %v411_v13  ;;  %v369_v12 = vld [vmem:[#allocation5 + $0x9b0] sm:$0xff]  ;;  %v370_v13 = vld [vmem:[#allocation5 + $0x9b8] sm:$0xff] }
  0x9b   :  { %838 = vmatpush.msra.mxu1 %v412_v14  ;;  %861 = vmatpush.msra.mxu2 %v341_v15  ;;  %v415_v14 = vld [vmem:[#allocation5 + $0xb20] sm:$0xff]  ;;  %v416_v15 = vld [vmem:[#allocation5 + $0xb28] sm:$0xff] }
  0x9c   :  { %881 = vmatpush.msra.mxu3 %v342_v16  ;;  %819 = vmatpush.msra.mxu0 %v387_v17  ;;  %v345_v16 = vld [vmem:[#allocation5 + $0x8f0] sm:$0xff]  ;;  %v346_v17 = vld [vmem:[#allocation5 + $0x8f8] sm:$0xff] }
  0x9d   :  { %839 = vmatpush.msra.mxu1 %v388_v18  ;;  %862 = vmatpush.msra.mxu2 %v317_v19  ;;  %v391_v18 = vld [vmem:[#allocation5 + $0xa60] sm:$0xff]  ;;  %v392_v19 = vld [vmem:[#allocation5 + $0xa68] sm:$0xff] }
  0x9e   :  { %882 = vmatpush.msra.mxu3 %v318_v20  ;;  %820 = vmatpush.msra.mxu0 %v363_v21  ;;  %v321_v20 = vld [vmem:[#allocation5 + $0x830] sm:$0xff]  ;;  %v322_v21 = vld [vmem:[#allocation5 + $0x838] sm:$0xff] }
  0x9f   :  { %840 = vmatpush.msra.mxu1 %v364_v22  ;;  %863 = vmatpush.msra.mxu2 %v293_v23  ;;  %v367_v22 = vld [vmem:[#allocation5 + $0x9a0] sm:$0xff]  ;;  %v368_v23 = vld [vmem:[#allocation5 + $0x9a8] sm:$0xff] }
  0xa0   :  { %883 = vmatpush.msra.mxu3 %v294_v24  ;;  %821 = vmatpush.msra.mxu0 %v339_v25  ;;  %v297_v24 = vld [vmem:[#allocation5 + $0x770] sm:$0xff]  ;;  %v298_v25 = vld [vmem:[#allocation5 + $0x778] sm:$0xff] }
  0xa1   :  { %841 = vmatpush.msra.mxu1 %v340_v26  ;;  %864 = vmatpush.msra.mxu2 %v269_v27  ;;  %v343_v26 = vld [vmem:[#allocation5 + $0x8e0] sm:$0xff]  ;;  %v344_v27 = vld [vmem:[#allocation5 + $0x8e8] sm:$0xff] }
  0xa2   :  { %884 = vmatpush.msra.mxu3 %v270_v28  ;;  %822 = vmatpush.msra.mxu0 %v315_v29  ;;  %v273_v28 = vld [vmem:[#allocation5 + $0x6b0] sm:$0xff]  ;;  %v274_v29 = vld [vmem:[#allocation5 + $0x6b8] sm:$0xff] }
  0xa3   :  { %842 = vmatpush.msra.mxu1 %v316_v30  ;;  %865 = vmatpush.msra.mxu2 %v245_v31  ;;  %v319_v30 = vld [vmem:[#allocation5 + $0x820] sm:$0xff]  ;;  %v320_v31 = vld [vmem:[#allocation5 + $0x828] sm:$0xff] }
  0xa4   :  { %885 = vmatpush.msra.mxu3 %v246_v32  ;;  %823 = vmatpush.msra.mxu0 %v291_v33  ;;  %v249_v32 = vld [vmem:[#allocation5 + $0x5f0] sm:$0xff]  ;;  %v250_v33 = vld [vmem:[#allocation5 + $0x5f8] sm:$0xff] }
  0xa5   :  { %843 = vmatpush.msra.mxu1 %v292_v34  ;;  %866 = vmatpush.msra.mxu2 %v221_v35  ;;  %v295_v34 = vld [vmem:[#allocation5 + $0x760] sm:$0xff]  ;;  %v296_v35 = vld [vmem:[#allocation5 + $0x768] sm:$0xff] }
  0xa6   :  { %886 = vmatpush.msra.mxu3 %v222_v36  ;;  %824 = vmatpush.msra.mxu0 %v267_v37  ;;  %v225_v36 = vld [vmem:[#allocation5 + $0x530] sm:$0xff]  ;;  %v226_v37 = vld [vmem:[#allocation5 + $0x538] sm:$0xff] }
  0xa7   :  { %844 = vmatpush.msra.mxu1 %v268_v38  ;;  %867 = vmatpush.msra.mxu2 %v197_v39  ;;  %v271_v38 = vld [vmem:[#allocation5 + $0x6a0] sm:$0xff]  ;;  %v272_v39 = vld [vmem:[#allocation5 + $0x6a8] sm:$0xff] }
  0xa8   :  { %887 = vmatpush.msra.mxu3 %v198_v40  ;;  %825 = vmatpush.msra.mxu0 %v243_v41  ;;  %v201_v40 = vld [vmem:[#allocation5 + $0x470] sm:$0xff]  ;;  %v202_v41 = vld [vmem:[#allocation5 + $0x478] sm:$0xff] }
  0xa9   :  { %845 = vmatpush.msra.mxu1 %v244_v42  ;;  %868 = vmatpush.msra.mxu2 %v173_v43  ;;  %v247_v42 = vld [vmem:[#allocation5 + $0x5e0] sm:$0xff]  ;;  %v248_v43 = vld [vmem:[#allocation5 + $0x5e8] sm:$0xff] }
  0xaa   :  { %888 = vmatpush.msra.mxu3 %v174_v44  ;;  %826 = vmatpush.msra.mxu0 %v219_v45  ;;  %v177_v44 = vld [vmem:[#allocation5 + $0x3b0] sm:$0xff]  ;;  %v178_v45 = vld [vmem:[#allocation5 + $0x3b8] sm:$0xff] }
  0xab   :  { %846 = vmatpush.msra.mxu1 %v220_v46  ;;  %869 = vmatpush.msra.mxu2 %v149_v47  ;;  %v1181_v46 = vld [vmem:[#allocation7] sm:$0xff] }
  0xac   :  { %889 = vmatpush.msra.mxu3 %v150_v48  ;;  %827 = vmatpush.msra.mxu0 %v195_v49  ;;  %v223_v47 = vld [vmem:[#allocation5 + $0x520] sm:$0xff]  ;;  %v224_v48 = vld [vmem:[#allocation5 + $0x528] sm:$0xff]  ;;  %v153_v49 = vld [vmem:[#allocation5 + $0x2f0] sm:$0xff] }
  0xad   :  { %847 = vmatpush.msra.mxu1 %v196_v50  ;;  %870 = vmatpush.msra.mxu2 %v125_v51  ;;  %v154_v50 = vld [vmem:[#allocation5 + $0x2f8] sm:$0xff]  ;;  %v199_v51 = vld [vmem:[#allocation5 + $0x460] sm:$0xff] }
  0xae   :  { %890 = vmatpush.msra.mxu3 %v126_v52  ;;  %828 = vmatpush.msra.mxu0 %v171_v53  ;;  %v200_v52 = vld [vmem:[#allocation5 + $0x468] sm:$0xff]  ;;  %v451_v53 = vperm.slane %v1181_v46, 2 }
  0xaf   :  { %848 = vmatpush.msra.mxu1 %v172_v54  ;;  %871 = vmatpush.msra.mxu2 %v101_v55  ;;  %v129_v54 = vld [vmem:[#allocation5 + $0x230] sm:$0xff]  ;;  %v130_v55 = vld [vmem:[#allocation5 + $0x238] sm:$0xff] }
  0xb0   :  { %891 = vmatpush.msra.mxu3 %v102_v56  ;;  %829 = vmatpush.msra.mxu0 %v147_v57  ;;  %v449_v56 = vperm.slane %v1181_v46, 0  ;;  %v450_v57 = vperm.slane %v1181_v46, 1 }
  0xb1   :  { %849 = vmatpush.msra.mxu1 %v148_v59  ;;  %872 = vmatpush.msra.mxu2 %v77_v60  ;;  %v452_v59 = vperm.slane %v1181_v46, 3  ;;  %v175_v60 = vld [vmem:[#allocation5 + $0x3a0] sm:$0xff] }
  0xb2   :  { %892 = vmatpush.msra.mxu3 %v78_v61  ;;  %793 = vmatmul.f32.vlgmr.msrb.gmra.mxu2 %v1163_v58  ;;  %v176_v61 = vld [vmem:[#allocation5 + $0x3a8] sm:$0xff] }
  0xb3   :  { %813 = vmatmul.f32.vlgmr.msrb.gmra.mxu3 %v1163_v58  ;;  %937 = vmatpush.msrb.mxu2 %v441_v62  ;;  %v106_v62 = vld [vmem:[#allocation5 + $0x178] sm:$0xff] }
  0xb4   :  { %957 = vmatpush.msrb.mxu3 %v442_v63  ;;  %830 = vmatpush.msra.mxu0 %v123_v0 }
  0xb5   :  { %850 = vmatpush.msra.mxu1 %v124_v1  ;;  %938 = vmatpush.msrb.mxu2 %v417_v2 }
  0xb6   :  { %958 = vmatpush.msrb.mxu3 %v418_v3  ;;  %831 = vmatpush.msra.mxu0 %v99_v4  ;;  %v151_v4 = vld [vmem:[#allocation5 + $0x2e0] sm:$0xff] }
  0xb7   :  { %851 = vmatpush.msra.mxu1 %v100_v5  ;;  %939 = vmatpush.msrb.mxu2 %v393_v6  ;;  %v152_v5 = vld [vmem:[#allocation5 + $0x2e8] sm:$0xff] }
  0xb8   :  { %959 = vmatpush.msrb.mxu3 %v394_v7  ;;  %832 = vmatpush.msra.mxu0 %v75_v8 }
  0xb9   :  { %852 = vmatpush.msra.mxu1 %v76_v9  ;;  %753 = vmatmul.f32.vlgmr.msrb.gmra.mxu0 %v1163_v58  ;;  %v81_v9 = vld [vmem:[#allocation5 + $0xb0] sm:$0xff] }
  0xba   :  { %773 = vmatmul.f32.vlgmr.msrb.gmra.mxu1 %v1163_v58  ;;  %897 = vmatpush.msrb.mxu0 %v439_v10  ;;  %v82_v10 = vld [vmem:[#allocation5 + $0xb8] sm:$0xff] }
  0xbb   :  { %917 = vmatpush.msrb.mxu1 %v440_v11  ;;  %940 = vmatpush.msrb.mxu2 %v369_v12  ;;  %v1025_v11 = vld [vmem:[#allocation2] sm:$0xff]  ;;  %v127_v12 = vld [vmem:[#allocation5 + $0x220] sm:$0xff] }
  0xbc   :  { %960 = vmatpush.msrb.mxu3 %v370_v13  ;;  %898 = vmatpush.msrb.mxu0 %v415_v14  ;;  %v128_v13 = vld [vmem:[#allocation5 + $0x228] sm:$0xff]  ;;  %v103_v14 = vld [vmem:[#allocation5 + $0x160] sm:$0xff] }
  0xbd   :  { %918 = vmatpush.msrb.mxu1 %v416_v15  ;;  %941 = vmatpush.msrb.mxu2 %v345_v16  ;;  %v104_v15 = vld [vmem:[#allocation5 + $0x168] sm:$0xff]  ;;  %v79_v16 = vld [vmem:[#allocation5 + $0xa0] sm:$0xff] }
  0xbe   :  { %961 = vmatpush.msrb.mxu3 %v346_v17  ;;  %899 = vmatpush.msrb.mxu0 %v391_v18  ;;  %v80_v17 = vld [vmem:[#allocation5 + $0xa8] sm:$0xff]  ;;  %v455_v18 = vperm.slane %v1181_v46, 6 }
  0xbf   :  { %919 = vmatpush.msrb.mxu1 %v392_v19  ;;  %942 = vmatpush.msrb.mxu2 %v321_v20  ;;  %v453_v19 = vperm.slane %v1181_v46, 4  ;;  %v454_v20 = vperm.slane %v1181_v46, 5 }
  0xc0   :  { %962 = vmatpush.msrb.mxu3 %v322_v21  ;;  %900 = vmatpush.msrb.mxu0 %v367_v22  ;;  %v456_v21 = vperm.slane %v1181_v46, 7 }
  0xc1   :  { %920 = vmatpush.msrb.mxu1 %v368_v23  ;;  %943 = vmatpush.msrb.mxu2 %v297_v24 }
  0xc2   :  { %963 = vmatpush.msrb.mxu3 %v298_v25  ;;  %901 = vmatpush.msrb.mxu0 %v343_v26 }
  0xc3   :  { %921 = vmatpush.msrb.mxu1 %v344_v27  ;;  %944 = vmatpush.msrb.mxu2 %v273_v28 }
  0xc4   :  { %964 = vmatpush.msrb.mxu3 %v274_v29  ;;  %902 = vmatpush.msrb.mxu0 %v319_v30  ;;  %v444_v30 = vld [vmem:[#allocation7 + $0x8] sm:$0xff] }
  0xc5   :  { %922 = vmatpush.msrb.mxu1 %v320_v31  ;;  %945 = vmatpush.msrb.mxu2 %v249_v32  ;;  %v459_v31 = vperm.slane %v444_v30, 2  ;;  %v457_v32 = vperm.slane %v444_v30, 0  ;;  %v464_v46 = vperm.slane %v444_v30, 7 }
  0xc6   :  { %965 = vmatpush.msrb.mxu3 %v250_v33  ;;  %903 = vmatpush.msrb.mxu0 %v295_v34  ;;  %v458_v33 = vperm.slane %v444_v30, 1  ;;  %v460_v34 = vperm.slane %v444_v30, 3 }
  0xc7   :  { %923 = vmatpush.msrb.mxu1 %v296_v35  ;;  %946 = vmatpush.msrb.mxu2 %v225_v36 }
  0xc8   :  { %966 = vmatpush.msrb.mxu3 %v226_v37  ;;  %904 = vmatpush.msrb.mxu0 %v271_v38 }
  0xc9   :  { %924 = vmatpush.msrb.mxu1 %v272_v39  ;;  %947 = vmatpush.msrb.mxu2 %v201_v40 }
  0xca   :  { %967 = vmatpush.msrb.mxu3 %v202_v41  ;;  %905 = vmatpush.msrb.mxu0 %v247_v42 }
  0xcb   :  { %925 = vmatpush.msrb.mxu1 %v248_v43  ;;  %948 = vmatpush.msrb.mxu2 %v177_v44  ;;  %v463_v43 = vperm.slane %v444_v30, 6  ;;  %v461_v44 = vperm.slane %v444_v30, 4 }
  0xcc   :  { %968 = vmatpush.msrb.mxu3 %v178_v45  ;;  %873 = vmatmul.f32.vlgmr.msra.gmra.mxu2 %v1163_v58  ;;  %v462_v45 = vperm.slane %v444_v30, 5 }
  0xcd   :  { %893 = vmatmul.f32.vlgmr.msra.gmra.mxu3 %v1163_v58  ;;  %906 = vmatpush.msrb.mxu0 %v223_v47  ;;  %v105_v58 = vld [vmem:[#allocation5 + $0x170] sm:$0xff]  ;;  %v554_v63 = vpop.f32.mrf.mxu2 }
  0xce   :  { %926 = vmatpush.msrb.mxu1 %v224_v48  ;;  %949 = vmatpush.msrb.mxu2 %v153_v49  ;;  %v555_v3 = vadd.f32 %v554_v63, %v451_v53 }
  0xcf   :  { %969 = vmatpush.msrb.mxu3 %v154_v50  ;;  %907 = vmatpush.msrb.mxu0 %v199_v51  ;;  %v574_v0 = vpop.f32.mrf.mxu3  ;;  %v514_v1 = vpop.f32.mrf.mxu0 }
  0xd0   :  { %927 = vmatpush.msrb.mxu1 %v200_v52  ;;  %950 = vmatpush.msrb.mxu2 %v129_v54  ;;  %v515_v6 = vadd.f32 %v514_v1, %v449_v56  ;;  %v575_v8 = vadd.f32 %v574_v0, %v452_v59  ;;  %979 = vst [vmem:[#allocation8 + $0x10] sm:$0xff] %v555_v3 }
  0xd1   :  { %970 = vmatpush.msrb.mxu3 %v130_v55  ;;  %v534_v2 = vpop.f32.mrf.mxu1  ;;  %908 = vmatpush.msrb.mxu0 %v175_v60  ;;  %v445_v55 = vld [vmem:[#allocation7 + $0x10] sm:$0xff] }
  0xd2   :  { %928 = vmatpush.msrb.mxu1 %v176_v61  ;;  %v535_v7 = vadd.f32 %v534_v2, %v450_v57  ;;  %951 = vmatpush.msrb.mxu2 %v105_v58  ;;  %977 = vst [vmem:[#allocation8] sm:$0xff] %v515_v6  ;;  %v467_v56 = vperm.slane %v445_v55, 2  ;;  %v465_v57 = vperm.slane %v445_v55, 0  ;;  %v466_v59 = vperm.slane %v445_v55, 1 }
  0xd3   :  { %971 = vmatpush.msrb.mxu3 %v106_v62  ;;  %833 = vmatmul.f32.vlgmr.msra.gmra.mxu0 %v1025_v11  ;;  %980 = vst [vmem:[#allocation8 + $0x18] sm:$0xff] %v575_v8  ;;  %v468_v60 = vperm.slane %v445_v55, 3  ;;  %v471_v6 = vperm.slane %v445_v55, 6 }
  0xd4   :  { %853 = vmatmul.f32.vlgmr.msra.gmra.mxu1 %v1025_v11  ;;  %909 = vmatpush.msrb.mxu0 %v151_v4  ;;  %978 = vst [vmem:[#allocation8 + $0x8] sm:$0xff] %v535_v7  ;;  %v469_v4 = vperm.slane %v445_v55, 4  ;;  %v472_v7 = vperm.slane %v445_v55, 7 }
  0xd5   :  { %929 = vmatpush.msrb.mxu1 %v152_v5  ;;  %952 = vmatpush.msrb.mxu2 %v81_v9  ;;  %v470_v5 = vperm.slane %v445_v55, 5 }
  0xd6   :  { %972 = vmatpush.msrb.mxu3 %v82_v10  ;;  %953 = vmatmul.f32.vlgmr.msrb.gmra.mxu2 %v1025_v11 }
  0xd7   :  { %973 = vmatmul.f32.vlgmr.msrb.gmra.mxu3 %v1025_v11  ;;  %910 = vmatpush.msrb.mxu0 %v127_v12 }
  0xd8   :  { %930 = vmatpush.msrb.mxu1 %v128_v13 }
  0xd9   :  { %911 = vmatpush.msrb.mxu0 %v103_v14 }
  0xda   :  { %931 = vmatpush.msrb.mxu1 %v104_v15 }
  0xdb   :  { %912 = vmatpush.msrb.mxu0 %v79_v16 }
  0xdc   :  { %932 = vmatpush.msrb.mxu1 %v80_v17  ;;  %913 = vmatmul.f32.vlgmr.msrb.gmra.mxu0 %v1025_v11 }
  0xdd   :  { %933 = vmatmul.f32.vlgmr.msrb.gmra.mxu1 %v1025_v11 }
  0xf1   :  { %v634_v22 = vpop.f32.mrf.mxu2 }
  0xf2   :  { %v654_v23 = vpop.f32.mrf.mxu3  ;;  %v594_v24 = vpop.f32.mrf.mxu0  ;;  %v635_v26 = vadd.f32 %v634_v22, %v455_v18 }
  0xf3   :  { %v614_v25 = vpop.f32.mrf.mxu1  ;;  %v595_v27 = vadd.f32 %v594_v24, %v453_v19  ;;  %v655_v29 = vadd.f32 %v654_v23, %v456_v21 }
  0xf4   :  { %v615_v28 = vadd.f32 %v614_v25, %v454_v20  ;;  %983 = vst [vmem:[#allocation8 + $0x30] sm:$0xff] %v635_v26 }
  0xf5   :  { %981 = vst [vmem:[#allocation8 + $0x20] sm:$0xff] %v595_v27 }
  0xf6   :  { %982 = vst [vmem:[#allocation8 + $0x28] sm:$0xff] %v615_v28 }
  0xf7   :  { %984 = vst [vmem:[#allocation8 + $0x38] sm:$0xff] %v655_v29 }
 0x113   :  { %v714_v35 = vpop.f32.mrf.mxu2 }
 0x114   :  { %v734_v36 = vpop.f32.mrf.mxu3  ;;  %v674_v37 = vpop.f32.mrf.mxu0  ;;  %v715_v39 = vadd.f32 %v714_v35, %v459_v31 }
 0x115   :  { %v694_v38 = vpop.f32.mrf.mxu1  ;;  %v675_v40 = vadd.f32 %v674_v37, %v457_v32  ;;  %v735_v42 = vadd.f32 %v734_v36, %v460_v34 }
 0x116   :  { %v695_v41 = vadd.f32 %v694_v38, %v458_v33  ;;  %987 = vst [vmem:[#allocation8 + $0x50] sm:$0xff] %v715_v39 }
 0x117   :  { %985 = vst [vmem:[#allocation8 + $0x40] sm:$0xff] %v675_v40 }
 0x118   :  { %986 = vst [vmem:[#allocation8 + $0x48] sm:$0xff] %v695_v41 }
 0x119   :  { %988 = vst [vmem:[#allocation8 + $0x58] sm:$0xff] %v735_v42 }
 0x135   :  { %v794_v47 = vpop.f32.mrf.mxu2 }
 0x136   :  { %v814_v48 = vpop.f32.mrf.mxu3  ;;  %v754_v49 = vpop.f32.mrf.mxu0  ;;  %v795_v51 = vadd.f32 %v794_v47, %v463_v43 }
 0x137   :  { %v774_v50 = vpop.f32.mrf.mxu1  ;;  %v755_v52 = vadd.f32 %v754_v49, %v461_v44  ;;  %v815_v54 = vadd.f32 %v814_v48, %v464_v46 }
 0x138   :  { %v775_v53 = vadd.f32 %v774_v50, %v462_v45  ;;  %991 = vst [vmem:[#allocation8 + $0x70] sm:$0xff] %v795_v51 }
 0x139   :  { %989 = vst [vmem:[#allocation8 + $0x60] sm:$0xff] %v755_v52 }
 0x13a   :  { %990 = vst [vmem:[#allocation8 + $0x68] sm:$0xff] %v775_v53 }
 0x13b   :  { %992 = vst [vmem:[#allocation8 + $0x78] sm:$0xff] %v815_v54 }
 0x14f   :  { %v874_v61 = vpop.f32.mrf.mxu2 }
 0x150   :  { %v894_v58 = vpop.f32.mrf.mxu3  ;;  %v834_v62 = vpop.f32.mrf.mxu0  ;;  %v875_v0 = vadd.f32 %v874_v61, %v467_v56 }
 0x151   :  { %v854_v63 = vpop.f32.mrf.mxu1  ;;  %v835_v1 = vadd.f32 %v834_v62, %v465_v57  ;;  %v895_v3 = vadd.f32 %v894_v58, %v468_v60 }
 0x152   :  { %v855_v2 = vadd.f32 %v854_v63, %v466_v59  ;;  %995 = vst [vmem:[#allocation8 + $0x90] sm:$0xff] %v875_v0 }
 0x153   :  { %993 = vst [vmem:[#allocation8 + $0x80] sm:$0xff] %v835_v1 }
 0x154   :  { %994 = vst [vmem:[#allocation8 + $0x88] sm:$0xff] %v855_v2 }
 0x155   :  { %996 = vst [vmem:[#allocation8 + $0x98] sm:$0xff] %v895_v3 }
 0x159   :  { %v914_v8 = vpop.f32.mrf.mxu0  ;;  %v954_v12 = vpop.f32.mrf.mxu2 }
 0x15a   :  { %v934_v9 = vpop.f32.mrf.mxu1  ;;  %v915_v10 = vadd.f32 %v914_v8, %v469_v4  ;;  %v974_v13 = vpop.f32.mrf.mxu3  ;;  %v955_v14 = vadd.f32 %v954_v12, %v471_v6 }
 0x15b   :  { %v935_v11 = vadd.f32 %v934_v9, %v470_v5  ;;  %v975_v15 = vadd.f32 %v974_v13, %v472_v7 }
 0x15c   :  { %997 = vst [vmem:[#allocation8 + $0xa0] sm:$0xff] %v915_v10 }
 0x15d   :  { %998 = vst [vmem:[#allocation8 + $0xa8] sm:$0xff] %v935_v11 }
 0x15e   :  { %999 = vst [vmem:[#allocation8 + $0xb0] sm:$0xff] %v955_v14 }
 0x15f   :  { %1000 = vst [vmem:[#allocation8 + $0xb8] sm:$0xff] %v975_v15 }
 0x160   :  { %1011 = dma.vmem_to_hbm [thread:$0]  %s1007_s2, 3072, %s1009_s30, [#allocation4]  }
 0x161   :  { %1126 = dma.done.wait [#allocation4], 3072  }
 0x162   :  { %1127 = vsyncadd [#allocation4], 4294964224 }
 0x163   :  { %1016 = vsyncpa [#allocation3], 1 }
 0x164   :  { %1017 = vsyncpa [#allocation6], 1 }
 0x165   :  { %1018 = vsyncpa [#allocation4], 1 }

</bundles_post_ra>
